<compile_context>
chip_gen: v7x
topology: tpu7x:2x2x1
jax: 0.10.0
libtpu: 0.0.40
codegen_flags: <defaults>
</compile_context>

<pallas_src>
import jax
import jax.numpy as jnp
from jax.experimental import pallas as pl
from jax.experimental.pallas import tpu as pltpu


def _pa_kernel(x_ref, w1t_ref, b1_ref, w2t_ref, b2_ref, o_ref):
    # x_ref : (1, C, T)  pixel tile of one batch row (channels on sublanes)
    # w1t   : (8C, C)    first 1x1-conv weight, transposed (matmul dtype)
    # b1    : (8C, 1)    f32
    # w2t   : (1, 8C)    f32
    # b2    : (1,)       f32 scalar, lives in SMEM
    # o_ref : (1, C, T)
    x = x_ref[0]                                                         # (C, T) native dtype
    h = jnp.dot(w1t_ref[...], x, preferred_element_type=jnp.float32)    # (8C, T) f32 acc
    h = jnp.maximum(h + b1_ref[...], 0.0)                               # bias + ReLU
    y = jnp.dot(w2t_ref[...], h, preferred_element_type=jnp.float32)    # (1, T)
    y = jax.nn.sigmoid(y + b2_ref[0])                                   # EUP
    o_ref[0] = (x * y.astype(x.dtype)).astype(o_ref.dtype)              # bcast over C


def _lane_tile_cap(C, C8, itemsize, budget_bytes):
    """Largest 128-multiple lane tile whose tracked VMEM footprint fits the budget.

    Per lane: double-buffered in+out tiles (4*C*itemsize), f32 x-sized
    temporaries (2*4*C), the (8C, T) hidden activation plus one temp (2*4*C8).
    """
    per_lane = 4 * C * itemsize + 2 * 4 * C + 2 * 4 * C8 + 16
    cap = budget_bytes // per_lane
    cap = int(max(256, min(cap, 32768)))
    return (cap // 128) * 128


def _pick_tile(hw, cap):
    """Lane tile over H*W: full extent if small, else a 128-multiple (prefer divisors)."""
    if hw <= cap:
        return hw, hw                            # single full-extent block, no padding
    t = cap
    while t >= 128:                              # largest 128-multiple dividing hw
        if hw % t == 0:
            return t, hw
        t -= 128
    return cap, pl.cdiv(hw, cap) * cap           # ragged tail -> pad lane axis once


def pa_layer(x_nchw, w1, b1, w2, b2, *, lane_budget_bytes=16 * 1024 * 1024):
    """x_nchw: (B, C, H, W); w1: (C, 8C); b1: (8C,); w2: (8C, 1); b2: (1,)."""
    B, C, H, W = x_nchw.shape
    C8 = w1.shape[1]
    HW = H * W

    # Free view (trailing dims merge): no transpose, no extra HBM pass.
    x3 = x_nchw.reshape(B, C, HW)

    itemsize = jnp.dtype(x_nchw.dtype).itemsize
    cap = _lane_tile_cap(C, C8, itemsize, lane_budget_bytes)
    thw, HW_p = _pick_tile(HW, cap)
    if HW_p != HW:
        x3 = jnp.pad(x3, ((0, 0), (0, 0), (0, HW_p - HW)))  # zeros; sliced off below

    # Tiny parameter reshapes/transposes (a few KB at most).
    wdt = x_nchw.dtype if x_nchw.dtype == jnp.bfloat16 else jnp.float32
    w1t = jnp.transpose(w1).astype(wdt)               # (8C, C)   matmul dtype follows x
    b1c = b1.reshape(C8, 1).astype(jnp.float32)       # (8C, 1)
    w2t = jnp.transpose(w2).astype(jnp.float32)       # (1, 8C)
    b2s = b2.reshape(1).astype(jnp.float32)           # (1,)  SMEM scalar

    cost = pl.CostEstimate(
        flops=2 * B * HW * C8 * (C + 1) + B * HW * C,
        transcendentals=B * HW,
        bytes_accessed=2 * B * C * HW * itemsize
        + (w1.size + b1.size + w2.size + b2.size) * 4,
    )

    out = pl.pallas_call(
        _pa_kernel,
        out_shape=jax.ShapeDtypeStruct((B, C, HW_p), x_nchw.dtype),
        grid_spec=pltpu.PrefetchScalarGridSpec(
            num_scalar_prefetch=0,
            grid=(B, HW_p // thw),
            in_specs=[
                pl.BlockSpec((1, C, thw), lambda b, j: (b, 0, j)),    # x tile (lane-dense)
                pl.BlockSpec((C8, C), lambda b, j: (0, 0)),           # w1^T (whole, resident)
                pl.BlockSpec((C8, 1), lambda b, j: (0, 0)),           # b1   (whole)
                pl.BlockSpec((1, C8), lambda b, j: (0, 0)),           # w2^T (whole)
                pl.BlockSpec(memory_space=pltpu.MemorySpace.SMEM),    # b2 scalar in SMEM
            ],
            out_specs=pl.BlockSpec((1, C, thw), lambda b, j: (b, 0, j)),
        ),
        compiler_params=pltpu.CompilerParams(
            dimension_semantics=("parallel", "parallel"),
            vmem_limit_bytes=32 * 1024 * 1024,
        ),
        cost_estimate=cost,
    )(x3, w1t, b1c, w2t, b2s)

    if HW_p != HW:
        out = out[:, :, :HW]
    return out.reshape(B, C, H, W)


def pa_layer_ref(x, w1, b1, w2, b2):
    # Pure-JAX reference of the PyTorch forward (for correctness check).
    B, C, H, W = x.shape
    xm = jnp.transpose(x, (0, 2, 3, 1)).reshape(-1, C)
    h = jnp.maximum(xm @ w1 + b1, 0.0)
    y = jax.nn.sigmoid(h @ w2 + b2)
    out = xm * y
    return jnp.transpose(out.reshape(B, H, W, C), (0, 3, 1, 2))


if __name__ == "__main__":
    key = jax.random.PRNGKey(0)
    B, C, H, W = 2, 4, 16, 16
    C8 = C * 8

    k_x, k_w1, k_b1, k_w2, k_b2 = jax.random.split(key, 5)
    x = jax.random.normal(k_x, (B, C, H, W), dtype=jnp.float32)
    # Weights with shapes implied by nn.Conv2d(C, 8C, 1) / nn.Conv2d(8C, 1, 1).
    w1 = jax.random.normal(k_w1, (C, C8), dtype=jnp.float32) * 0.2
    b1 = jax.random.normal(k_b1, (C8,), dtype=jnp.float32) * 0.1
    w2 = jax.random.normal(k_w2, (C8, 1), dtype=jnp.float32) * 0.2
    b2 = jax.random.normal(k_b2, (1,), dtype=jnp.float32) * 0.1

    # Main check: single full-extent tile path.
    out = jax.block_until_ready(pa_layer(x, w1, b1, w2, b2))
    ref = jax.block_until_ready(pa_layer_ref(x, w1, b1, w2, b2))
    assert out.shape == (B, C, H, W)
    assert jnp.allclose(out, ref, atol=1e-5, rtol=1e-5)

    # Secondary check: force multi-tile + ragged-padding path with a tiny budget.
    x2 = jax.random.normal(k_x, (1, C, 24, 24), dtype=jnp.float32)
    out2 = jax.block_until_ready(
        pa_layer(x2, w1, b1, w2, b2, lane_budget_bytes=64 * 1024))
    ref2 = jax.block_until_ready(pa_layer_ref(x2, w1, b1, w2, b2))
    assert out2.shape == (1, C, 24, 24)
    assert jnp.allclose(out2, ref2, atol=1e-5, rtol=1e-5)

    print("KERNEL_OK")
</pallas_src>

<mosaic_0001>
module attributes {stable_mosaic.version = 11 : i64} {
  func.func @_pa_kernel(%arg0: i32, %arg1: i32, %arg2: memref<1x4x256xf32, #tpu.memory_space<vmem>>, %arg3: memref<32x4xf32, #tpu.memory_space<vmem>>, %arg4: memref<32x1xf32, #tpu.memory_space<vmem>>, %arg5: memref<1x32xf32, #tpu.memory_space<vmem>>, %arg6: memref<1xf32, #tpu.memory_space<smem>>, %arg7: memref<1x4x256xf32, #tpu.memory_space<vmem>>) attributes {dimension_semantics = [#tpu.dimension_semantics<parallel>, #tpu.dimension_semantics<parallel>], iteration_bounds = array<i64: 2, 1>, scalar_prefetch = 0 : i64, scratch_operands = 0 : i64, tpu.core_type = #tpu.core_type<tc>, window_params = [{transform_indices = @transform_0, window_bounds = array<i64: 1, 4, 256>}, {pipeline_mode = #tpu.pipeline_mode<synchronous>, transform_indices = @transform_1, window_bounds = array<i64: 32, 4>}, {pipeline_mode = #tpu.pipeline_mode<synchronous>, transform_indices = @transform_2, window_bounds = array<i64: 32, 1>}, {pipeline_mode = #tpu.pipeline_mode<synchronous>, transform_indices = @transform_3, window_bounds = array<i64: 1, 32>}, {transform_indices = @transform_4, window_bounds = array<i64: 1>}, {transform_indices = @transform_5, window_bounds = array<i64: 1, 4, 256>}]} {
    %c0 = arith.constant 0 : index
    %c0_0 = arith.constant 0 : index
    %c0_1 = arith.constant 0 : index
    %0 = vector.load %arg2[%c0, %c0_0, %c0_1] : memref<1x4x256xf32, #tpu.memory_space<vmem>>, vector<1x4x256xf32>
    %1 = vector.shape_cast %0 : vector<1x4x256xf32> to vector<4x256xf32>
    %c0_2 = arith.constant 0 : index
    %c0_3 = arith.constant 0 : index
    %2 = vector.load %arg3[%c0_2, %c0_3] : memref<32x4xf32, #tpu.memory_space<vmem>>, vector<32x4xf32>
    %cst = arith.constant dense<0.000000e+00> : vector<32x256xf32>
    %3 = tpu.matmul %2, %1, %cst {dimension_numbers = #tpu.dot_dimension_numbers<[1], [0], [0], [1], [0, 0, 1, 1], [], []>} : vector<32x4xf32>, vector<4x256xf32>, vector<32x256xf32> -> vector<32x256xf32>
    %c0_4 = arith.constant 0 : index
    %c0_5 = arith.constant 0 : index
    %4 = vector.load %arg4[%c0_4, %c0_5] : memref<32x1xf32, #tpu.memory_space<vmem>>, vector<32x1xf32>
    %5 = vector.broadcast %4 : vector<32x1xf32> to vector<32x256xf32>
    %6 = arith.addf %3, %5 : vector<32x256xf32>
    %cst_6 = arith.constant 0.000000e+00 : f32
    %7 = vector.broadcast %cst_6 : f32 to vector<32x256xf32>
    %8 = arith.maximumf %6, %7 : vector<32x256xf32>
    %c0_7 = arith.constant 0 : index
    %c0_8 = arith.constant 0 : index
    %9 = vector.load %arg5[%c0_7, %c0_8] : memref<1x32xf32, #tpu.memory_space<vmem>>, vector<1x32xf32>
    %cst_9 = arith.constant dense<0.000000e+00> : vector<1x256xf32>
    %10 = tpu.matmul %9, %8, %cst_9 {dimension_numbers = #tpu.dot_dimension_numbers<[1], [0], [0], [1], [0, 0, 1, 1], [], []>} : vector<1x32xf32>, vector<32x256xf32>, vector<1x256xf32> -> vector<1x256xf32>
    %c0_10 = arith.constant 0 : index
    %11 = memref.load %arg6[%c0_10] : memref<1xf32, #tpu.memory_space<smem>>
    %12 = vector.broadcast %11 : f32 to vector<1x256xf32>
    %13 = arith.addf %10, %12 : vector<1x256xf32>
    %14 = arith.negf %13 : vector<1x256xf32>
    %15 = math.exp %14 : vector<1x256xf32>
    %cst_11 = arith.constant 1.000000e+00 : f32
    %16 = vector.broadcast %cst_11 : f32 to vector<1x256xf32>
    %17 = arith.addf %16, %15 : vector<1x256xf32>
    %18 = arith.divf %16, %17 : vector<1x256xf32>
    %19 = vector.broadcast %18 : vector<1x256xf32> to vector<4x256xf32>
    %20 = arith.mulf %1, %19 : vector<4x256xf32>
    %c0_12 = arith.constant 0 : index
    %c0_13 = arith.constant 0 : index
    %c0_14 = arith.constant 0 : index
    %21 = vector.load %arg7[%c0_12, %c0_13, %c0_14] : memref<1x4x256xf32, #tpu.memory_space<vmem>>, vector<1x4x256xf32>
    %22 = vector.shape_cast %21 : vector<1x4x256xf32> to vector<4x256xf32>
    %23 = vector.shape_cast %20 : vector<4x256xf32> to vector<1x4x256xf32>
    tpu.vector_store %arg7[%c0_12, %c0_13, %c0_14], %23 {strides = array<i32>} : memref<1x4x256xf32, #tpu.memory_space<vmem>>, vector<1x4x256xf32>,
    return
  }
  func.func @transform_0(%arg0: i32, %arg1: i32) -> (i32, i32, i32) {
    %c0_i32 = arith.constant 0 : i32
    %c0_i32_0 = arith.constant 0 : i32
    return %arg0, %c0_i32, %arg1 : i32, i32, i32
  }
  func.func @transform_1(%arg0: i32, %arg1: i32) -> (i32, i32) {
    %c0_i32 = arith.constant 0 : i32
    %c0_i32_0 = arith.constant 0 : i32
    %c0_i32_1 = arith.constant 0 : i32
    return %c0_i32, %c0_i32_0 : i32, i32
  }
  func.func @transform_2(%arg0: i32, %arg1: i32) -> (i32, i32) {
    %c0_i32 = arith.constant 0 : i32
    %c0_i32_0 = arith.constant 0 : i32
    %c0_i32_1 = arith.constant 0 : i32
    return %c0_i32, %c0_i32_0 : i32, i32
  }
  func.func @transform_3(%arg0: i32, %arg1: i32) -> (i32, i32) {
    %c0_i32 = arith.constant 0 : i32
    %c0_i32_0 = arith.constant 0 : i32
    %c0_i32_1 = arith.constant 0 : i32
    return %c0_i32, %c0_i32_0 : i32, i32
  }
  func.func @transform_4(%arg0: i32, %arg1: i32) -> i32 {
    %c0_i32 = arith.constant 0 : i32
    %c0_i32_0 = arith.constant 0 : i32
    return %c0_i32 : i32
  }
  func.func @transform_5(%arg0: i32, %arg1: i32) -> (i32, i32, i32) {
    %c0_i32 = arith.constant 0 : i32
    %c0_i32_0 = arith.constant 0 : i32
    return %arg0, %c0_i32, %arg1 : i32, i32, i32
  }
}

</mosaic_0001>

<bundles_post_ra>
// kernel: tpu_custom_call.1
= control target key start
LH: loop header
LB: loop body
LE: loop exit
PB: predicated region body
PF: predicated region fallthrough
CT: control target
= control target key end

     0   :  { %s959_s0 = inlined_call_operand.vmem [shape: f32[2,4,256], index: 0, kind: input, shape index: {}]   ;;  %s960_s1 = inlined_call_operand.vmem [shape: f32[32,4], index: 1, kind: input, shape index: {}]   ;;  %s961_s2 = inlined_call_operand.vmem [shape: f32[32,1], index: 2, kind: input, shape index: {}]   ;;  %s962_s3 = inlined_call_operand.vmem [shape: f32[1,32], index: 3, kind: input, shape index: {}]   ;;  %s963_s4 = inlined_call_operand.<no memory space> [shape: f32[1], index: 4, kind: input, shape index: {}]   ;;  %s964_s5 = inlined_call_operand.hbm [shape: f32[2,4,256], index: 5, kind: output, shape index: {}]  }
   0x1   :  { %10 = sst [smem:[#allocation2]] %s963_s4 }
   0x2   :  { %11 = vsyncpa [#allocation4], 0 }
   0x3   :  { %13 = vsyncpa [#allocation4 + $0x1], 0  ;;  %s814_s20 = smov 0   ;;  %s816_s21 = smov 0  }
   0x4   :  { %s818_s22 = smov 0   ;;  %s820_s23 = smov 0  }
   0x5   :  { %s822_s24 = smov 0   ;;  %s824_s25 = smov 0  }
   0x6 LB: > { %s598_s4 = sadd.s32 4294967295, %s776_s25   ;;  %s599_s26 = sadd.s32 4294967294, %s776_s25   ;;  %s776_s25 = sphi %s824_s25, %s19_s25   ;;  %s772_s24 = sphi %s822_s24, %s971_s24   ;;  %s768_s23 = sphi %s820_s23, %s970_s23   ;;  %s764_s22 = sphi %s818_s22, %s969_s22   ;;  %s760_s21 = sphi %s816_s21, %s968_s21   ;;  %s756_s20 = sphi %s814_s20, %s967_s20  }
   0x7   : > { %s31_s27 = sadd.s32 1, %s772_s24  ;;  %s152_s28 = sadd.s32 1, %s764_s22 }
   0x8   : > { %p33_p0 = scmp.ge.s32.totalorder %s31_s27, 2  ;;  %p162_p1 = scmp.ne.s32.totalorder %s764_s22, %s760_s21 }
   0x9   : > { %p163_p2 = scmp.eq.s32.totalorder %s598_s4, 1  ;;  %p168_p3 = scmp.ne.s32.totalorder %s760_s21, %s756_s20 }
   0xa   : > { %s973_s27 = smov (%p33_p0, %s31_s27), 0  ;;  %p169_p5 = scmp.eq.s32.totalorder %s599_s26, 1 }
   0xb   : > { %p854_p4 = por %p163_p2, %p162_p1  ;;  %s147_s30 = ssub.s32 %s772_s24, %s973_s27 }
   0xc   : > { %p602_p6 = scmp.ge.s32.totalorder %s776_s25, 1  ;;  %p150_p7 = scmp.eq.s32.totalorder %s147_s30, 0 }
   0xd   : > { %p861_p8 = por %p169_p5, %p168_p3  ;;  %p212_p9 = scmp.lt.s32.totalorder %s776_s25, 3 }
   0xe   : > { %s867_s7 = scalar_select %p150_p7, %s764_s22, %s152_s28  }
   0xf   : > { %p213_p10 = pnand %p602_p6, %p212_p9 }
  0x10   : > { %p245_p11 = scmp.lt.s32.totalorder (!%p213_p10), %s768_s23, 1  ;;  %v778_v0 = vmov (!%p213_p10), 0.0   ;;  %v260_v1 = vld [vmem:[%s961_s2] sm:$0xff] (!%p213_p10)  ;;  %v779_v2 = vmov (!%p213_p10), 0   ;;  %v262_v3 = vld [vmem:[%s961_s2 + $0x10] sm:$0xff] (!%p213_p10)  ;;  %v261_v4 = vld [vmem:[%s961_s2 + $0x8] sm:$0xff] (!%p213_p10)  ;;  %v491_v56 = vlaneseq (!%p213_p10) }
  0x11   : > { %216 = sbr.rel (%p213_p10) target bundleno = 529 (0x211), region = 40  ;;  %368 = vmatprep.mubr.f32.mxu0 (!%p213_p10), %v778_v0  ;;  %472 = vmatprep.mubr.f32.mxu1 (!%p213_p10), %v778_v0  ;;  %v263_v5 = vld [vmem:[%s961_s2 + $0x18] sm:$0xff] (!%p213_p10)  ;;  %vm299_vm0 = vcmask (!%p213_p10), 1043456   ;;  %v256_v8 = vld [vmem:[%s960_s1] sm:$0xff] (!%p213_p10)  ;;  %vm286_vm1 = vcmask (!%p213_p10), 31744   ;;  %v257_v9 = vld [vmem:[%s960_s1 + $0x8] sm:$0xff] (!%p213_p10) }
  0x12   : > { %687 = vset.pattern.permute.xlu0 (!%p213_p10), %v779_v2  ;;  %688 = vset.pattern.permute.xlu1 (!%p213_p10), %v779_v2  ;;  %v258_v10 = vld [vmem:[%s960_s1 + $0x10] sm:$0xff] (!%p213_p10)  ;;  %v259_v11 = vld [vmem:[%s960_s1 + $0x18] sm:$0xff] (!%p213_p10)  ;;  %v401_v44 = vld [vmem:[%s962_s3] sm:$0x1] (!%p213_p10)  ;;  %vm404_vm2 = vcmask (!%p213_p10), 261120   ;;  %s402_s15 = sld [smem:[#allocation2]] (!%p213_p10) }
  0x13   : > { %266 = vperm.xlu0 (!%p213_p10), %687, %v260_v1   ;;  %276 = vperm.xlu1 (!%p213_p10), %688, %v262_v3   ;;  %v492_v57 = vshrl.u32 (!%p213_p10), %v491_v56, 7  ;;  %s241_s16 = sand.u32 (!%p213_p10), 1, %s760_s21   ;;  %s621_s18 = sshll.u32 (!%p213_p10), %s768_s23, 7 }
  0x14   : > { %s603_s17 = sshll.u32 (!%p213_p10), %s241_s16, 3  ;;  %s912_s30 = scalar_lea.hbm (!%p213_p10), %s964_s5, %s621_s18 }
  0x15   : > { %v493_v58 = vsub.s32 (!%p213_p10), 0, %v492_v57  ;;  %s243_s19 = scalar_lea.vmem (!%p213_p10), [#allocation3], %s603_s17  ;;  %s506_s8 = scalar_lea.sflag (!%p213_p10), [#allocation4], %s241_s16 }
  0x17   : > { %271 = vperm.xlu0 (!%p213_p10), %687, %v261_v4   ;;  %281 = vperm.xlu1 (!%p213_p10), %688, %v263_v5  }
  0x18   : > { %s246_s10 = scalar_select %p245_p11, %s768_s23, 1  ;;  %v403_v45 = vstv %s402_s15 }
  0x19   : > { %s780_s23 = smov [#allocation3]  }
  0x1a   : > { %s620_s13 = sshll.u32 %s246_s10, 3  ;;  %s702_s10 = sshll.u32 %s780_s23, 4  ;;  %s703_s10 = int_to_ptr.vmem [resolvable:$false] %s702_s10 }
  0x1b   : > { %s252_s4 = scalar_lea.vmem %s959_s0, %s620_s13  ;;  %s704_s11 = scalar_lea.vmem %s703_s10, 256 }
  0x1c   : > { %v886_v6 = vld [vmem:[%s252_s4] sm:$0xff]  ;;  %s522_s4 = sshll.u32 %s243_s19, 4  ;;  %s914_s4 = int_to_ptr.vmem [resolvable:$true] %s522_s4 }
  0x1d   : > { %v285_v7 = vcombine.high %v886_v6, %v886_v6  ;;  %s698_s9 = scalar_lea.vmem %s914_s4, 128  ;;  %p705_p1 = scmp.lt.s32.totalorder %s914_s4, %s703_s10 }
  0x1e   : > { %p699_p12 = scmp.ne.s32.totalorder %s914_s4, %s698_s9  ;;  %p706_p2 = scmp.lt.s32.totalorder %s704_s11, %s698_s9 }
  0x1f   : > { %606 = vmatprep.subr.msk.mxu0 %vm299_vm0, %v285_v7 }
  0x20   : > { %607 = vmatpush1.msk.msra.mxu0 %vm299_vm0, %v886_v6  ;;  %p700_p13 = pnand %p699_p12, %p854_p4  ;;  %p707_p3 = por %p706_p2, %p705_p1 }
  0x21   : > { %608 = vmatmul.mubr.msk.f32.vlgmr.msra.gmra.mrb[0].mxu0 %vm286_vm1, %v256_v8 }
  0x22   : > { %374 = vmatprep.mubr.f32.mxu0 %v778_v0  ;;  %p701_p0 = pneg %p700_p13 }
  0x24   : > { %p708_p5 = pnand %p707_p3, %p701_p0 }
  0x25   : > { %609 = vmatmul.mubr.msk.f32.gmra.mrb[2].mxu0 %vm286_vm1, %v257_v9 }
  0x26   : > { %380 = vmatprep.mubr.f32.mxu0 %v778_v0 }
  0x29   : > { %610 = vmatmul.mubr.msk.f32.gmra.mrb[4].mxu0 %vm286_vm1, %v258_v10 }
  0x2a   : > { %386 = vmatprep.mubr.f32.mxu0 %v778_v0 }
  0x2d   : > { %611 = vmatmul.mubr.msk.f32.gmra.mrb[6].mxu0 %vm286_vm1, %v259_v11 }
  0x92   : > { %v267_v12 = vpop.permute.xlu0 %266  ;;  %v277_v21 = vpop.permute.xlu1 %276 }
  0x96   : > { %v272_v15 = vpop.permute.xlu0 %271  ;;  %v282_v32 = vpop.permute.xlu1 %281 }
  0xf4   : > { %v370_v13 = vpop.f32.mrb[0].mxu0 }
  0xf5   : > { %v372_v14 = vpop.f32.mrb[1].mxu0  ;;  %v371_v16 = vadd.f32 %v370_v13, %v267_v12 }
  0xf6   : > { %v373_v17 = vadd.f32 %v372_v14, %v267_v12 }
  0xf7   : > { %v393_v23 = vmax.f32 %v371_v16, 0.0 }
  0xf8   : > { %v376_v18 = vpop.f32.mrb[2].mxu0  ;;  %v394_v25 = vmax.f32 %v373_v17, 0.0 }
  0xf9   : > { %v377_v19 = vadd.f32 %v376_v18, %v272_v15  ;;  %v378_v20 = vpop.f32.mrb[3].mxu0 }
  0xfa   : > { %v379_v22 = vadd.f32 %v378_v20, %v272_v15 }
  0xfb   : > { %v395_v24 = vmax.f32 %v377_v19, 0.0 }
  0xfc   : > { %v396_v26 = vmax.f32 %v379_v22, 0.0  ;;  %v382_v27 = vpop.f32.mrb[4].mxu0 }
  0xfd   : > { %v384_v28 = vpop.f32.mrb[5].mxu0  ;;  %v624_v29 = vpack.c.bf16 %v395_v24, %v393_v23  ;;  %v383_v31 = vadd.f32 %v382_v27, %v277_v21 }
  0xfe   : > { %v622_v30 = vpack.c.bf16 %v396_v26, %v394_v25  ;;  %v385_v33 = vadd.f32 %v384_v28, %v277_v21 }
  0xff   : > { %v397_v38 = vmax.f32 %v383_v31, 0.0 }
 0x100   : > { %v388_v34 = vpop.f32.mrb[6].mxu0  ;;  %623 = vmatprep.subr.bf16.mxu1 %v622_v30  ;;  %v398_v40 = vmax.f32 %v385_v33, 0.0 }
 0x101   : > { %v389_v35 = vadd.f32 %v388_v34, %v282_v32  ;;  %v390_v36 = vpop.f32.mrb[7].mxu0  ;;  %625 = vmatpush1.bf16.msra.mxu1 %v624_v29 }
 0x102   : > { %v391_v37 = vadd.f32 %v390_v36, %v282_v32 }
 0x103   : > { %v399_v39 = vmax.f32 %v389_v35, 0.0 }
 0x104   : > { %v400_v41 = vmax.f32 %v391_v37, 0.0 }
 0x105   : > { %v628_v42 = vpack.c.bf16 %v399_v39, %v397_v38 }
 0x106   : > { %v626_v43 = vpack.c.bf16 %v400_v41, %v398_v40 }
 0x108   : > { %627 = vmatprep.subr.bf16.mxu1 %v626_v43 }
 0x109   : > { %629 = vmatpush1.bf16.msra.mxu1 %v628_v42 }
 0x10c   : > { %612 = vmatmul.mubr.msk.f32.vlgmr.msra.gmra.mrb[0].mxu1 %vm404_vm2, %v401_v44 }
 0x1df   : > { %v474_v46 = vpop.f32.mrb[0].mxu1 }
 0x1e0   : > { %v475_v47 = vadd.f32 %v474_v46, %v403_v45  ;;  %v476_v48 = vpop.f32.mrb[1].mxu1 }
 0x1e1   : > { %v477_v49 = vadd.f32 %v476_v48, %v403_v45 }
 0x1e2   : > { %v613_v50 = vmul.f32 -1.442695, %v475_v47 }
 0x1e3   : > { %v614_v51 = vmul.f32 -1.442695, %v477_v49 }
 0x1e4   : > { %690 = vpow2.f32 %v613_v50 }
 0x1e5   : > { %692 = vpow2.f32 %v614_v51 }
 0x1ee   : > { %v691_v52 = vpop.eup %690 }
 0x1ef   : > { %v693_v53 = vpop.eup %692  ;;  %v485_v54 = vadd.f32 1.0, %v691_v52 }
 0x1f0   : > { %v486_v55 = vadd.f32 1.0, %v693_v53 }
 0x1f1   : > { %694 = vrcp.f32 %v485_v54 }
 0x1f2   : > { %696 = vrcp.f32 %v486_v55 }
 0x1fb   : > { %v695_v59 = vpop.eup %694 }
 0x1fc   : > { %v697_v60 = vpop.eup %696  ;;  %v494_v61 = vrot.slane %v695_v59, %v493_v58 }
 0x1fd   : > { %v498_v62 = vrot.slane %v697_v60, %v493_v58 }
 0x1ff   : > { %v501_v63 = vcombine.low %v494_v61, %v498_v62 }
 0x201   : > { %v503_v0 = vmul.f32 %v501_v63, %v886_v6 }
 0x203   : > { %504 = vst [vmem:[%s243_s19] sm:$0xff] %v503_v0 }
 0x204   : > { %711 = shalt.err (!%p708_p5)
}
 0x205   : > { %s712_s12 = scalar_lea.hbm %s912_s30, 128  ;;  %s716_s15 = scalar_lea.hbm %s964_s5, 256 }
 0x206   : > { %p713_p6 = scmp.ne.s32.totalorder %s912_s30, %s712_s12  ;;  %p717_p10 = scmp.lt.u32.totalorder %s912_s30, %s964_s5 }
 0x207   : > { %p718_p11 = scmp.lt.u32.totalorder %s716_s15, %s712_s12  ;;  %p720_p13 = scmp.lt.u32.totalorder %s712_s12, %s912_s30 }
 0x208   : > { %p714_p7 = pnand %p713_p6, %p854_p4 }
 0x209   : > { %p719_p12 = por %p718_p11, %p717_p10 }
 0x20a   : > { %p715_p9 = pneg %p714_p7 }
 0x20b   : > { %p721_p0 = por %p720_p13, %p719_p12 }
 0x20d   : > { %p722_p1 = pnand %p721_p0, %p715_p9 }
 0x20f   : > { %725 = shalt.err (!%p722_p1)
}
 0x210   : > { %630 = dma.vmem_to_hbm [thread:$0]  (%p854_p4), %s914_s4, 128, %s912_s30, %s506_s8  }
 0x211 PF: > { %p636_p2 = scmp.ge.s32.totalorder %s776_s25, 2  ;;  %s534_s18 = sand.u32 1, %s756_s20  }
 0x212   : > { %s535_s19 = scalar_lea.sflag [#allocation4], %s534_s18 }
 0x213   : > { %p633_p3 = pnand %p636_p2, %p861_p8 }
 0x215   : > { %751 = dma.done.wait (!%p633_p3), %s535_s19, 128  }
 0x216   : > { %753 = vsyncadd (!%p633_p3), %s535_s19, 4294967168  ;;  %s19_s25 = sadd.s32 1, %s776_s25   ;;  %s967_s20 = smov %s760_s21 }
 0x217   : > { %p16_p5 = scmp.ge.s32.totalorder %s19_s25, 4   ;;  %s968_s21 = smov %s764_s22 }
 0x218   : > { %s969_s22 = smov %s867_s7  ;;  %s970_s23 = smov %s772_s24 }
 0x219   : > { %s971_s24 = smov %s973_s27  ;;  %18 = sbr.rel (!%p16_p5) target bundleno = 6 (0x6), region = 75 }
 0x220   :  { %540 = vsyncpa [#allocation4], 1 }
 0x221   :  { %542 = vsyncpa [#allocation4 + $0x1], 1 }

</bundles_post_ra>
